<compile_context>
chip_gen: v6e
topology: v6e:2x2x1
jax: 0.10.0
libtpu: 0.0.40
codegen_flags: <defaults>
</compile_context>

<pallas_src>
import functools

import jax
import jax.numpy as jnp
from jax.experimental import pallas as pl
from jax.experimental.pallas import tpu as pltpu


def _round_up(x, m):
    return (x + m - 1) // m * m


def _conv_mm_kernel(x_ref, w_ref, b_ref, *rest, emit_relu):
    """One (TM, TN) output tile of X @ W + b, accumulated over the K grid axis.

    If emit_relu, additionally writes relu(out) in bf16 (used as the fused
    input of the following conv).
    """
    if emit_relu:
        o_ref, r_ref, acc_ref = rest
    else:
        o_ref, acc_ref = rest
        r_ref = None

    k = pl.program_id(2)

    @pl.when(k == 0)
    def _init():
        acc_ref[...] = jnp.zeros_like(acc_ref)

    acc_ref[...] += jnp.dot(
        x_ref[...], w_ref[...], preferred_element_type=jnp.float32
    )

    @pl.when(k == pl.num_programs(2) - 1)
    def _epilogue():
        y = acc_ref[...] + b_ref[...]            # bias only once, in epilogue
        o_ref[...] = y
        if emit_relu:
            r_ref[...] = jnp.maximum(y, 0.0).astype(r_ref.dtype)


def _conv3x3_s2_p1_nhwc(x_nhwc, w_oihw, b, *, emit_relu=False):
    """3x3 conv, stride 2, pad 1 (PyTorch Conv2d semantics). NHWC in / NHWC out.

    Returns conv(x) in f32; if emit_relu also returns relu(conv(x)) in bf16.
    """
    N, H, W, Cin = x_nhwc.shape
    Cout = w_oihw.shape[0]
    Ho = (H + 2 - 3) // 2 + 1
    Wo = (W + 2 - 3) // 2 + 1

    # Pad spatially, cast once to bf16 (halves im2col HBM bytes, MXU-native).
    xp = jnp.pad(x_nhwc, ((0, 0), (1, 1), (1, 1), (0, 0))).astype(jnp.bfloat16)

    # im2col: 9 strided taps, ordered (kh, kw, cin).
    taps = [
        xp[:, kh:kh + 2 * Ho:2, kw:kw + 2 * Wo:2, :]
        for kh in range(3)
        for kw in range(3)
    ]
    pat = jnp.concatenate(taps, axis=-1).reshape(N * Ho * Wo, 9 * Cin)
    M, K = pat.shape

    # PyTorch OIHW -> (kh, kw, cin, cout) -> [K, Cout] to match tap order.
    w = jnp.transpose(w_oihw, (2, 3, 1, 0)).reshape(K, Cout).astype(jnp.bfloat16)
    b2 = b.reshape(1, Cout).astype(jnp.float32)

    # ---- tile sizes -------------------------------------------------------
    TM = 256 if M >= 256 else _round_up(M, 8)       # 256-aligned for v6e/v7x MXU
    M_pad = _round_up(M, TM)
    Cout_pad = _round_up(Cout, 128)                 # lane-dense output stores
    TN = 256 if Cout_pad % 256 == 0 else 128
    TK = K                                          # full K unless nicely tileable
    for cand in (1024, 512, 256, 128):
        if K % cand == 0:
            TK = cand
            break
    n_k = K // TK

    # Zero-pad M and Cout (zeros are inert; sliced away below).
    pat = jnp.pad(pat, ((0, M_pad - M), (0, 0)))
    w = jnp.pad(w, ((0, 0), (0, Cout_pad - Cout)))
    b2 = jnp.pad(b2, ((0, 0), (0, Cout_pad - Cout)))

    grid = (M_pad // TM, Cout_pad // TN, n_k)

    out_spec = pl.BlockSpec((TM, TN), lambda i, j, k: (i, j))
    if emit_relu:
        out_shape = (
            jax.ShapeDtypeStruct((M_pad, Cout_pad), jnp.float32),
            jax.ShapeDtypeStruct((M_pad, Cout_pad), jnp.bfloat16),
        )
        out_specs = (out_spec, pl.BlockSpec((TM, TN), lambda i, j, k: (i, j)))
    else:
        out_shape = jax.ShapeDtypeStruct((M_pad, Cout_pad), jnp.float32)
        out_specs = out_spec

    x_bytes = M_pad * K * 2
    w_bytes = K * Cout_pad * 2
    o_bytes = M_pad * Cout_pad * (4 + (2 if emit_relu else 0))
    cost = pl.CostEstimate(
        flops=2 * M_pad * K * Cout_pad,
        transcendentals=0,
        bytes_accessed=x_bytes + w_bytes + o_bytes,
    )

    result = pl.pallas_call(
        functools.partial(_conv_mm_kernel, emit_relu=emit_relu),
        out_shape=out_shape,
        grid=grid,
        in_specs=[
            pl.BlockSpec((TM, TK), lambda i, j, k: (i, k)),
            pl.BlockSpec((TK, TN), lambda i, j, k: (k, j)),
            pl.BlockSpec((1, TN), lambda i, j, k: (0, j)),
        ],
        out_specs=out_specs,
        scratch_shapes=[pltpu.VMEM((TM, TN), jnp.float32)],
        compiler_params=pltpu.CompilerParams(
            dimension_semantics=("parallel", "parallel", "arbitrary"),
            vmem_limit_bytes=32 * 1024 * 1024,
        ),
        cost_estimate=cost,
    )(pat, w, b2)

    if emit_relu:
        o_flat, r_flat = result
        o = o_flat[:M, :Cout].reshape(N, Ho, Wo, Cout)
        r = r_flat[:M, :Cout].reshape(N, Ho, Wo, Cout)
        return o, r
    o = result[:M, :Cout].reshape(N, Ho, Wo, Cout)
    return o


@jax.jit
def last_level_p6p7_p5(c5, p6_w, p6_b, p7_w, p7_b):
    # Single NCHW -> NHWC transpose at the input; NHWC kept between convs.
    x = jnp.transpose(c5, (0, 2, 3, 1))
    p6_nhwc, p6_relu_nhwc = _conv3x3_s2_p1_nhwc(x, p6_w, p6_b, emit_relu=True)
    p7_nhwc = _conv3x3_s2_p1_nhwc(p6_relu_nhwc, p7_w, p7_b, emit_relu=False)
    p6 = jnp.transpose(p6_nhwc, (0, 3, 1, 2))
    p7 = jnp.transpose(p7_nhwc, (0, 3, 1, 2))
    return [p6, p7]


def _ref_conv(x, w, b):
    # Reference conv with the same bf16-operand / f32-accumulate numerics.
    y = jax.lax.conv_general_dilated(
        x.astype(jnp.bfloat16), w.astype(jnp.bfloat16),
        window_strides=(2, 2), padding=((1, 1), (1, 1)),
        dimension_numbers=("NCHW", "OIHW", "NCHW"),
        preferred_element_type=jnp.float32)
    return y + b.reshape(1, -1, 1, 1)


if __name__ == "__main__":
    in_channels, out_channels = 4, 8
    N, H, W = 2, 16, 16

    key = jax.random.PRNGKey(0)
    k_x, k_w6, k_b6, k_w7, k_b7 = jax.random.split(key, 5)

    c5 = jax.random.normal(k_x, (N, in_channels, H, W), dtype=jnp.float32)

    # Deterministic synthetic init (stands in for c2_xavier_fill).
    fan6 = in_channels * 9
    p6_w = jax.random.uniform(
        k_w6, (out_channels, in_channels, 3, 3), jnp.float32,
        minval=-1.0, maxval=1.0) * (1.0 / jnp.sqrt(fan6))
    p6_b = jnp.zeros((out_channels,), jnp.float32)

    fan7 = out_channels * 9
    p7_w = jax.random.uniform(
        k_w7, (out_channels, out_channels, 3, 3), jnp.float32,
        minval=-1.0, maxval=1.0) * (1.0 / jnp.sqrt(fan7))
    p7_b = jnp.zeros((out_channels,), jnp.float32)

    p6, p7 = last_level_p6p7_p5(c5, p6_w, p6_b, p7_w, p7_b)
    jax.block_until_ready(p6)
    jax.block_until_ready(p7)

    # Sanity check against XLA reference conv (same bf16/f32 numerics).
    p6_ref = _ref_conv(c5, p6_w, p6_b)
    p7_ref = _ref_conv(jnp.maximum(p6_ref, 0.0), p7_w, p7_b)
    assert p6.shape == (N, out_channels, H // 2, W // 2)
    assert p7.shape == (N, out_channels, H // 4, W // 4)
    assert jnp.allclose(p6, p6_ref, atol=5e-2, rtol=5e-2), "p6 mismatch"
    assert jnp.allclose(p7, p7_ref, atol=5e-2, rtol=5e-2), "p7 mismatch"

    print("KERNEL_OK")
</pallas_src>

<mosaic_0001>
module attributes {stable_mosaic.version = 11 : i64} {
  func.func @_conv_mm_kernel(%arg0: i32, %arg1: i32, %arg2: i32, %arg3: memref<128x36xbf16, #tpu.memory_space<vmem>>, %arg4: memref<36x128xbf16, #tpu.memory_space<vmem>>, %arg5: memref<1x128xf32, #tpu.memory_space<vmem>>, %arg6: memref<128x128xf32, #tpu.memory_space<vmem>>, %arg7: memref<128x128xbf16, #tpu.memory_space<vmem>>, %arg8: memref<128x128xf32, #tpu.memory_space<vmem>>) attributes {dimension_semantics = [#tpu.dimension_semantics<parallel>, #tpu.dimension_semantics<parallel>, #tpu.dimension_semantics<arbitrary>], iteration_bounds = array<i64: 1, 1, 1>, scalar_prefetch = 0 : i64, scratch_operands = 1 : i64, tpu.core_type = #tpu.core_type<tc>, window_params = [{transform_indices = @transform_0, window_bounds = array<i64: 128, 36>}, {transform_indices = @transform_1, window_bounds = array<i64: 36, 128>}, {transform_indices = @transform_2, window_bounds = array<i64: 1, 128>}, {transform_indices = @transform_3, window_bounds = array<i64: 128, 128>}, {transform_indices = @transform_4, window_bounds = array<i64: 128, 128>}]} {
    %c0_i32 = arith.constant 0 : i32
    %0 = arith.cmpi eq, %arg2, %c0_i32 : i32
    %1 = arith.extui %0 : i1 to i32
    %c0_i32_0 = arith.constant 0 : i32
    %2 = arith.cmpi ne, %1, %c0_i32_0 : i32
    scf.if %2 {
      %cst_10 = arith.constant 0.000000e+00 : f32
      %12 = vector.broadcast %cst_10 : f32 to vector<128x128xf32>
      %c0_11 = arith.constant 0 : index
      %c0_12 = arith.constant 0 : index
      %13 = vector.load %arg8[%c0_11, %c0_12] : memref<128x128xf32, #tpu.memory_space<vmem>>, vector<128x128xf32>
      tpu.vector_store %arg8[%c0_11, %c0_12], %12 {strides = array<i32>} : memref<128x128xf32, #tpu.memory_space<vmem>>, vector<128x128xf32>,
    } else {
    }
    %c0 = arith.constant 0 : index
    %c0_1 = arith.constant 0 : index
    %3 = vector.load %arg8[%c0, %c0_1] : memref<128x128xf32, #tpu.memory_space<vmem>>, vector<128x128xf32>
    %c0_2 = arith.constant 0 : index
    %c0_3 = arith.constant 0 : index
    %4 = vector.load %arg3[%c0_2, %c0_3] : memref<128x36xbf16, #tpu.memory_space<vmem>>, vector<128x36xbf16>
    %c0_4 = arith.constant 0 : index
    %c0_5 = arith.constant 0 : index
    %5 = vector.load %arg4[%c0_4, %c0_5] : memref<36x128xbf16, #tpu.memory_space<vmem>>, vector<36x128xbf16>
    %cst = arith.constant dense<0.000000e+00> : vector<128x128xf32>
    %6 = tpu.matmul %4, %5, %cst {dimension_numbers = #tpu.dot_dimension_numbers<[1], [0], [0], [1], [0, 0, 1, 1], [], []>} : vector<128x36xbf16>, vector<36x128xbf16>, vector<128x128xf32> -> vector<128x128xf32>
    %7 = arith.addf %3, %6 : vector<128x128xf32>
    %c0_6 = arith.constant 0 : index
    %c0_7 = arith.constant 0 : index
    %8 = vector.load %arg8[%c0_6, %c0_7] : memref<128x128xf32, #tpu.memory_space<vmem>>, vector<128x128xf32>
    tpu.vector_store %arg8[%c0_6, %c0_7], %7 {strides = array<i32>} : memref<128x128xf32, #tpu.memory_space<vmem>>, vector<128x128xf32>,
    %c0_i32_8 = arith.constant 0 : i32
    %9 = arith.cmpi eq, %arg2, %c0_i32_8 : i32
    %10 = arith.extui %9 : i1 to i32
    %c0_i32_9 = arith.constant 0 : i32
    %11 = arith.cmpi ne, %10, %c0_i32_9 : i32
    scf.if %11 {
      %c0_10 = arith.constant 0 : index
      %c0_11 = arith.constant 0 : index
      %12 = vector.load %arg8[%c0_10, %c0_11] : memref<128x128xf32, #tpu.memory_space<vmem>>, vector<128x128xf32>
      %c0_12 = arith.constant 0 : index
      %c0_13 = arith.constant 0 : index
      %13 = vector.load %arg5[%c0_12, %c0_13] : memref<1x128xf32, #tpu.memory_space<vmem>>, vector<1x128xf32>
      %14 = vector.broadcast %13 : vector<1x128xf32> to vector<128x128xf32>
      %15 = arith.addf %12, %14 : vector<128x128xf32>
      %c0_14 = arith.constant 0 : index
      %c0_15 = arith.constant 0 : index
      %16 = vector.load %arg6[%c0_14, %c0_15] : memref<128x128xf32, #tpu.memory_space<vmem>>, vector<128x128xf32>
      tpu.vector_store %arg6[%c0_14, %c0_15], %15 {strides = array<i32>} : memref<128x128xf32, #tpu.memory_space<vmem>>, vector<128x128xf32>,
      %cst_16 = arith.constant 0.000000e+00 : f32
      %17 = vector.broadcast %cst_16 : f32 to vector<128x128xf32>
      %18 = arith.maximumf %15, %17 : vector<128x128xf32>
      %19 = arith.truncf %18 : vector<128x128xf32> to vector<128x128xbf16>
      %c0_17 = arith.constant 0 : index
      %c0_18 = arith.constant 0 : index
      %20 = vector.load %arg7[%c0_17, %c0_18] : memref<128x128xbf16, #tpu.memory_space<vmem>>, vector<128x128xbf16>
      tpu.vector_store %arg7[%c0_17, %c0_18], %19 {strides = array<i32>} : memref<128x128xbf16, #tpu.memory_space<vmem>>, vector<128x128xbf16>,
    } else {
    }
    return
  }
  func.func @transform_0(%arg0: i32, %arg1: i32, %arg2: i32) -> (i32, i32) {
    %c0_i32 = arith.constant 0 : i32
    return %arg0, %arg2 : i32, i32
  }
  func.func @transform_1(%arg0: i32, %arg1: i32, %arg2: i32) -> (i32, i32) {
    %c0_i32 = arith.constant 0 : i32
    return %arg2, %arg1 : i32, i32
  }
  func.func @transform_2(%arg0: i32, %arg1: i32, %arg2: i32) -> (i32, i32) {
    %c0_i32 = arith.constant 0 : i32
    %c0_i32_0 = arith.constant 0 : i32
    return %c0_i32, %arg1 : i32, i32
  }
  func.func @transform_3(%arg0: i32, %arg1: i32, %arg2: i32) -> (i32, i32) {
    %c0_i32 = arith.constant 0 : i32
    return %arg0, %arg1 : i32, i32
  }
  func.func @transform_4(%arg0: i32, %arg1: i32, %arg2: i32) -> (i32, i32) {
    %c0_i32 = arith.constant 0 : i32
    return %arg0, %arg1 : i32, i32
  }
}

module attributes {stable_mosaic.version = 11 : i64} {
  func.func @_conv_mm_kernel(%arg0: i32, %arg1: i32, %arg2: i32, %arg3: memref<32x72xbf16, #tpu.memory_space<vmem>>, %arg4: memref<72x128xbf16, #tpu.memory_space<vmem>>, %arg5: memref<1x128xf32, #tpu.memory_space<vmem>>, %arg6: memref<32x128xf32, #tpu.memory_space<vmem>>, %arg7: memref<32x128xf32, #tpu.memory_space<vmem>>) attributes {dimension_semantics = [#tpu.dimension_semantics<parallel>, #tpu.dimension_semantics<parallel>, #tpu.dimension_semantics<arbitrary>], iteration_bounds = array<i64: 1, 1, 1>, scalar_prefetch = 0 : i64, scratch_operands = 1 : i64, tpu.core_type = #tpu.core_type<tc>, window_params = [{transform_indices = @transform_0, window_bounds = array<i64: 32, 72>}, {transform_indices = @transform_1, window_bounds = array<i64: 72, 128>}, {transform_indices = @transform_2, window_bounds = array<i64: 1, 128>}, {transform_indices = @transform_3, window_bounds = array<i64: 32, 128>}]} {
    %c0_i32 = arith.constant 0 : i32
    %0 = arith.cmpi eq, %arg2, %c0_i32 : i32
    %1 = arith.extui %0 : i1 to i32
    %c0_i32_0 = arith.constant 0 : i32
    %2 = arith.cmpi ne, %1, %c0_i32_0 : i32
    scf.if %2 {
      %cst_10 = arith.constant 0.000000e+00 : f32
      %12 = vector.broadcast %cst_10 : f32 to vector<32x128xf32>
      %c0_11 = arith.constant 0 : index
      %c0_12 = arith.constant 0 : index
      %13 = vector.load %arg7[%c0_11, %c0_12] : memref<32x128xf32, #tpu.memory_space<vmem>>, vector<32x128xf32>
      tpu.vector_store %arg7[%c0_11, %c0_12], %12 {strides = array<i32>} : memref<32x128xf32, #tpu.memory_space<vmem>>, vector<32x128xf32>,
    } else {
    }
    %c0 = arith.constant 0 : index
    %c0_1 = arith.constant 0 : index
    %3 = vector.load %arg7[%c0, %c0_1] : memref<32x128xf32, #tpu.memory_space<vmem>>, vector<32x128xf32>
    %c0_2 = arith.constant 0 : index
    %c0_3 = arith.constant 0 : index
    %4 = vector.load %arg3[%c0_2, %c0_3] : memref<32x72xbf16, #tpu.memory_space<vmem>>, vector<32x72xbf16>
    %c0_4 = arith.constant 0 : index
    %c0_5 = arith.constant 0 : index
    %5 = vector.load %arg4[%c0_4, %c0_5] : memref<72x128xbf16, #tpu.memory_space<vmem>>, vector<72x128xbf16>
    %cst = arith.constant dense<0.000000e+00> : vector<32x128xf32>
    %6 = tpu.matmul %4, %5, %cst {dimension_numbers = #tpu.dot_dimension_numbers<[1], [0], [0], [1], [0, 0, 1, 1], [], []>} : vector<32x72xbf16>, vector<72x128xbf16>, vector<32x128xf32> -> vector<32x128xf32>
    %7 = arith.addf %3, %6 : vector<32x128xf32>
    %c0_6 = arith.constant 0 : index
    %c0_7 = arith.constant 0 : index
    %8 = vector.load %arg7[%c0_6, %c0_7] : memref<32x128xf32, #tpu.memory_space<vmem>>, vector<32x128xf32>
    tpu.vector_store %arg7[%c0_6, %c0_7], %7 {strides = array<i32>} : memref<32x128xf32, #tpu.memory_space<vmem>>, vector<32x128xf32>,
    %c0_i32_8 = arith.constant 0 : i32
    %9 = arith.cmpi eq, %arg2, %c0_i32_8 : i32
    %10 = arith.extui %9 : i1 to i32
    %c0_i32_9 = arith.constant 0 : i32
    %11 = arith.cmpi ne, %10, %c0_i32_9 : i32
    scf.if %11 {
      %c0_10 = arith.constant 0 : index
      %c0_11 = arith.constant 0 : index
      %12 = vector.load %arg7[%c0_10, %c0_11] : memref<32x128xf32, #tpu.memory_space<vmem>>, vector<32x128xf32>
      %c0_12 = arith.constant 0 : index
      %c0_13 = arith.constant 0 : index
      %13 = vector.load %arg5[%c0_12, %c0_13] : memref<1x128xf32, #tpu.memory_space<vmem>>, vector<1x128xf32>
      %14 = vector.broadcast %13 : vector<1x128xf32> to vector<32x128xf32>
      %15 = arith.addf %12, %14 : vector<32x128xf32>
      %c0_14 = arith.constant 0 : index
      %c0_15 = arith.constant 0 : index
      %16 = vector.load %arg6[%c0_14, %c0_15] : memref<32x128xf32, #tpu.memory_space<vmem>>, vector<32x128xf32>
      tpu.vector_store %arg6[%c0_14, %c0_15], %15 {strides = array<i32>} : memref<32x128xf32, #tpu.memory_space<vmem>>, vector<32x128xf32>,
    } else {
    }
    return
  }
  func.func @transform_0(%arg0: i32, %arg1: i32, %arg2: i32) -> (i32, i32) {
    %c0_i32 = arith.constant 0 : i32
    return %arg0, %arg2 : i32, i32
  }
  func.func @transform_1(%arg0: i32, %arg1: i32, %arg2: i32) -> (i32, i32) {
    %c0_i32 = arith.constant 0 : i32
    return %arg2, %arg1 : i32, i32
  }
  func.func @transform_2(%arg0: i32, %arg1: i32, %arg2: i32) -> (i32, i32) {
    %c0_i32 = arith.constant 0 : i32
    %c0_i32_0 = arith.constant 0 : i32
    return %c0_i32, %arg1 : i32, i32
  }
  func.func @transform_3(%arg0: i32, %arg1: i32, %arg2: i32) -> (i32, i32) {
    %c0_i32 = arith.constant 0 : i32
    return %arg0, %arg1 : i32, i32
  }
}

</mosaic_0001>

<bundles_post_ra>
// kernel: last_level_p6p7_p5.2
= control target key start
LH: loop header
LB: loop body
LE: loop exit
PB: predicated region body
PF: predicated region fallthrough
CT: control target
= control target key end

     0   :  { %vm154_vm0 = vcmask 1041408   ;;  %vm129_vm1 = vcmask 293888   ;;  %s759_s1 = inlined_call_operand.vmem [shape: bf16[36,128], index: 1, kind: input, shape index: {}]   ;;  %s760_s0 = inlined_call_operand.vmem [shape: bf16[128,36], index: 0, kind: input, shape index: {}]   ;;  %s761_s2 = inlined_call_operand.vmem [shape: f32[1,128], index: 2, kind: input, shape index: {}]   ;;  %s762_s3 = inlined_call_operand.vmem [shape: f32[128,128], index: 3, kind: output, shape index: {0}]   ;;  %s763_s4 = inlined_call_operand.vmem [shape: bf16[128,128], index: 4, kind: output, shape index: {1}]  }
   0x1   :  { %v589_v0 = vld [vmem:[%s759_s1 + $0x10] ss:$0 sps:$4 sm:$0x33]   ;;  %v590_v1 = vld [vmem:[%s759_s1 + $0x8] sm:$0xff]   ;;  %v591_v3 = vld [vmem:[%s759_s1] sm:$0xff]  }
   0x2   :  { %587 = vmatprep.subr.msk.bf16.mxu0 %vm154_vm0, %v589_v0  ;;  %588 = vmatprep.subr.msk.bf16.mxu1 %vm154_vm0, %v589_v0  ;;  %v156_v2 = vsel %vm154_vm0, %v589_v0, 0  ;;  %v592_v4 = vld [vmem:[%s760_s0] sm:$0xff]   ;;  %v594_v6 = vld [vmem:[%s760_s0 + $0x8] sm:$0xff]   ;;  %v596_v8 = vld [vmem:[%s760_s0 + $0x10] sm:$0xff]  }
   0x3   :  { %560 = vmatpush3.bf16.msra.mxu0 %v156_v2  ;;  %584 = vmatpush3.bf16.msra.mxu1 %v156_v2  ;;  %v593_v5 = vld [vmem:[%s760_s0 + $0x20] sm:$0xff]   ;;  %v595_v7 = vld [vmem:[%s760_s0 + $0x28] sm:$0xff]   ;;  %v597_v9 = vld [vmem:[%s760_s0 + $0x30] sm:$0xff]  }
   0x4   :  { %561 = vmatprep.subr.bf16.mxu0 %v590_v1  ;;  %582 = vmatprep.subr.bf16.mxu1 %v590_v1  ;;  %v598_v10 = vld [vmem:[%s760_s0 + $0x18] sm:$0xff]   ;;  %v669_v12 = vld [vmem:[%s761_s2] ss:$0 sm:$0xff] }
   0x5   :  { %565 = vmatprep.mubr.msk.bf16.mxu0 %vm129_vm1, %v592_v4  ;;  %573 = vmatprep.mubr.msk.bf16.mxu1 %vm129_vm1, %v593_v5  ;;  %v599_v11 = vld [vmem:[%s760_s0 + $0x38] sm:$0xff]  }
   0x7   :  { %562 = vmatpush3.bf16.msra.mxu0 %v590_v1  ;;  %585 = vmatpush3.bf16.msra.mxu1 %v590_v1 }
   0x8   :  { %563 = vmatprep.subr.bf16.mxu0 %v591_v3  ;;  %583 = vmatprep.subr.bf16.mxu1 %v591_v3 }
   0xb   :  { %564 = vmatpush3.bf16.msra.mxu0 %v591_v3  ;;  %586 = vmatpush3.bf16.msra.mxu1 %v591_v3 }
   0xe   :  { %566 = vmatmul.mubr.msk.bf16.vlgmr.msra.gmra.mxu0 %vm129_vm1, %v594_v6  ;;  %574 = vmatmul.mubr.msk.bf16.vlgmr.msra.gmra.mxu1 %vm129_vm1, %v595_v7 }
   0xf   :  { %569 = vmatprep.mubr.msk.bf16.mxu0 %vm129_vm1, %v596_v8  ;;  %577 = vmatprep.mubr.msk.bf16.mxu1 %vm129_vm1, %v597_v9 }
  0x16   :  { %570 = vmatmul.mubr.msk.bf16.gmra.mxu0 %vm129_vm1, %v598_v10  ;;  %578 = vmatmul.mubr.msk.bf16.gmra.mxu1 %vm129_vm1, %v599_v11 }
  0xce   :  { %v567_v13 = vpop.f32.mrf.mxu0  ;;  %v575_v14 = vpop.f32.mrf.mxu1 }
  0xcf   :  { %v315_v15 = vadd.f32 %v567_v13, %v669_v12  ;;  %v323_v16 = vadd.f32 %v575_v14, %v669_v12 }
  0xd0   :  { %v192_v17 = vpop.f32.mrf.mxu0  ;;  %v224_v18 = vpop.f32.mrf.mxu1 }
  0xd1   :  { %331 = vst [vmem:[%s762_s3 + $0x10] sm:$0xff] %v315_v15  ;;  %339 = vst [vmem:[%s762_s3 + $0x50] sm:$0xff] %v323_v16  ;;  %v313_v19 = vadd.f32 %v669_v12, %v192_v17  ;;  %v321_v20 = vadd.f32 %v669_v12, %v224_v18  ;;  %v347_v25 = vmax.f32 %v315_v15, 0.0  ;;  %v355_v26 = vmax.f32 %v323_v16, 0.0 }
  0xd2   :  { %v568_v21 = vpop.f32.mrf.mxu0  ;;  %v576_v22 = vpop.f32.mrf.mxu1 }
  0xd3   :  { %329 = vst [vmem:[%s762_s3] sm:$0xff] %v313_v19  ;;  %337 = vst [vmem:[%s762_s3 + $0x40] sm:$0xff] %v321_v20  ;;  %v316_v23 = vadd.f32 %v568_v21, %v669_v12  ;;  %v324_v24 = vadd.f32 %v576_v22, %v669_v12  ;;  %v345_v33 = vmax.f32 %v313_v19, 0.0  ;;  %v353_v34 = vmax.f32 %v321_v20, 0.0 }
  0xd4   :  { %v195_v27 = vpop.f32.mrf.mxu0  ;;  %v227_v28 = vpop.f32.mrf.mxu1 }
  0xd5   :  { %332 = vst [vmem:[%s762_s3 + $0x18] sm:$0xff] %v316_v23  ;;  %v348_v29 = vmax.f32 %v316_v23, 0.0  ;;  %340 = vst [vmem:[%s762_s3 + $0x58] sm:$0xff] %v324_v24  ;;  %v356_v30 = vmax.f32 %v324_v24, 0.0  ;;  %v314_v31 = vadd.f32 %v669_v12, %v195_v27  ;;  %v322_v32 = vadd.f32 %v669_v12, %v227_v28 }
  0xd6   :  { %v571_v35 = vpop.f32.mrf.mxu0  ;;  %v579_v36 = vpop.f32.mrf.mxu1 }
  0xd7   :  { %v509_v37 = vpack.c.bf16 %v348_v29, %v347_v25  ;;  %v529_v38 = vpack.c.bf16 %v356_v30, %v355_v26  ;;  %330 = vst [vmem:[%s762_s3 + $0x8] sm:$0xff] %v314_v31  ;;  %v346_v39 = vmax.f32 %v314_v31, 0.0  ;;  %338 = vst [vmem:[%s762_s3 + $0x48] sm:$0xff] %v322_v32  ;;  %v354_v40 = vmax.f32 %v322_v32, 0.0 }
  0xd8   :  { %v319_v41 = vadd.f32 %v571_v35, %v669_v12  ;;  %v327_v42 = vadd.f32 %v579_v36, %v669_v12  ;;  %v208_v43 = vpop.f32.mrf.mxu0  ;;  %v240_v44 = vpop.f32.mrf.mxu1 }
  0xd9   :  { %541 = vst [vmem:[%s763_s4 + $0x8] sm:$0xff] %v509_v37   ;;  %545 = vst [vmem:[%s763_s4 + $0x28] sm:$0xff] %v529_v38   ;;  %v504_v45 = vpack.c.bf16 %v346_v39, %v345_v33  ;;  %v524_v46 = vpack.c.bf16 %v354_v40, %v353_v34  ;;  %v317_v47 = vadd.f32 %v669_v12, %v208_v43 }
  0xda   :  { %v325_v48 = vadd.f32 %v669_v12, %v240_v44  ;;  %335 = vst [vmem:[%s762_s3 + $0x30] sm:$0xff] %v319_v41  ;;  %343 = vst [vmem:[%s762_s3 + $0x70] sm:$0xff] %v327_v42  ;;  %v572_v49 = vpop.f32.mrf.mxu0  ;;  %v580_v50 = vpop.f32.mrf.mxu1  ;;  %v351_v53 = vmax.f32 %v319_v41, 0.0  ;;  %v359_v54 = vmax.f32 %v327_v42, 0.0 }
  0xdb   :  { %505 = vst [vmem:[%s763_s4] sm:$0xff] %v504_v45   ;;  %544 = vst [vmem:[%s763_s4 + $0x20] sm:$0xff] %v524_v46   ;;  %v320_v51 = vadd.f32 %v572_v49, %v669_v12  ;;  %v328_v52 = vadd.f32 %v580_v50, %v669_v12  ;;  %v349_v61 = vmax.f32 %v317_v47, 0.0 }
  0xdc   :  { %333 = vst [vmem:[%s762_s3 + $0x20] sm:$0xff] %v317_v47  ;;  %341 = vst [vmem:[%s762_s3 + $0x60] sm:$0xff] %v325_v48  ;;  %v211_v55 = vpop.f32.mrf.mxu0  ;;  %v243_v56 = vpop.f32.mrf.mxu1  ;;  %v357_v62 = vmax.f32 %v325_v48, 0.0 }
  0xdd   :  { %336 = vst [vmem:[%s762_s3 + $0x38] sm:$0xff] %v320_v51  ;;  %v352_v57 = vmax.f32 %v320_v51, 0.0  ;;  %344 = vst [vmem:[%s762_s3 + $0x78] sm:$0xff] %v328_v52  ;;  %v360_v58 = vmax.f32 %v328_v52, 0.0  ;;  %v318_v59 = vadd.f32 %v669_v12, %v211_v55  ;;  %v326_v60 = vadd.f32 %v669_v12, %v243_v56 }
  0xdf   :  { %v519_v63 = vpack.c.bf16 %v352_v57, %v351_v53  ;;  %v539_v0 = vpack.c.bf16 %v360_v58, %v359_v54  ;;  %334 = vst [vmem:[%s762_s3 + $0x28] sm:$0xff] %v318_v59  ;;  %v350_v1 = vmax.f32 %v318_v59, 0.0  ;;  %342 = vst [vmem:[%s762_s3 + $0x68] sm:$0xff] %v326_v60  ;;  %v358_v2 = vmax.f32 %v326_v60, 0.0 }
  0xe1   :  { %543 = vst [vmem:[%s763_s4 + $0x18] sm:$0xff] %v519_v63   ;;  %547 = vst [vmem:[%s763_s4 + $0x38] sm:$0xff] %v539_v0   ;;  %v514_v3 = vpack.c.bf16 %v350_v1, %v349_v61  ;;  %v534_v4 = vpack.c.bf16 %v358_v2, %v357_v62 }
  0xe3   :  { %542 = vst [vmem:[%s763_s4 + $0x10] sm:$0xff] %v514_v3   ;;  %546 = vst [vmem:[%s763_s4 + $0x30] sm:$0xff] %v534_v4  }

// kernel: last_level_p6p7_p5.3
= control target key start
LH: loop header
LB: loop body
LE: loop exit
PB: predicated region body
PF: predicated region fallthrough
CT: control target
= control target key end

     0   :  { %vm85_vm0 = vcmask 1043456   ;;  %vm78_vm1 = vcmask 588800   ;;  %s298_s0 = inlined_call_operand.vmem [shape: bf16[32,72], index: 0, kind: input, shape index: {}]   ;;  %s299_s1 = inlined_call_operand.vmem [shape: bf16[72,128], index: 1, kind: input, shape index: {}]   ;;  %s300_s2 = inlined_call_operand.vmem [shape: f32[1,128], index: 2, kind: input, shape index: {}]   ;;  %s301_s3 = inlined_call_operand.hbm [shape: f32[32,128], index: 3, kind: output, shape index: {}]  }
   0x1   :  { %v219_v0 = vld [vmem:[%s299_s1 + $0x20] ss:$0 sps:$4 sm:$0xff]   ;;  %v220_v1 = vld [vmem:[%s299_s1 + $0x18] sm:$0xff]   ;;  %v221_v3 = vld [vmem:[%s299_s1 + $0x10] sm:$0xff]  }
   0x2   :  { %215 = vmatprep.subr.msk.bf16.mxu0 %vm85_vm0, %v219_v0  ;;  %v87_v2 = vsel %vm85_vm0, %v219_v0, 0  ;;  %v224_v4 = vld [vmem:[%s298_s0] sm:$0xff]  }
   0x3   :  { %202 = vmatpush3.bf16.msra.mxu0 %v87_v2 }
   0x4   :  { %203 = vmatprep.subr.bf16.mxu0 %v220_v1 }
   0x5   :  { %8 = vsyncpa [#allocation4], 0  ;;  %211 = vmatprep.mubr.msk.bf16.mxu0 %vm78_vm1, %v224_v4  ;;  %v222_v5 = vld [vmem:[%s299_s1 + $0x8] sm:$0xff]   ;;  %v223_v6 = vld [vmem:[%s299_s1] sm:$0xff]   ;;  %s248_s28 = smov [#allocation3]  }
   0x6   :  { %v225_v7 = vld [vmem:[%s298_s0 + $0x8] sm:$0xff]   ;;  %v193_v8 = vld [vmem:[%s300_s2] ss:$0 sm:$0xff]  ;;  %s173_s29 = sshll.u32 %s248_s28, 4  ;;  %s174_s29 = int_to_ptr.vmem [resolvable:$true] %s173_s29 }
   0x7   :  { %204 = vmatpush3.bf16.msra.mxu0 %v220_v1  ;;  %s226_s0 = scalar_lea.vmem %s174_s29, 512  ;;  %p231_p1 = scmp.lt.s32.totalorder %s174_s29, %s174_s29 }
   0x8   :  { %205 = vmatprep.subr.bf16.mxu0 %v221_v3  ;;  %p227_p0 = scmp.ne.s32.totalorder %s174_s29, %s226_s0  ;;  %p232_p2 = scmp.lt.s32.totalorder %s226_s0, %s226_s0 }
   0xa   :  { %p233_p3 = por %p232_p2, %p231_p1 }
   0xb   :  { %206 = vmatpush3.bf16.msra.mxu0 %v221_v3 }
   0xc   :  { %207 = vmatprep.subr.bf16.mxu0 %v222_v5  ;;  %p234_p4 = pnand %p233_p3, %p227_p0 }
   0xf   :  { %208 = vmatpush3.bf16.msra.mxu0 %v222_v5 }
  0x10   :  { %209 = vmatprep.subr.bf16.mxu0 %v223_v6 }
  0x13   :  { %210 = vmatpush3.bf16.msra.mxu0 %v223_v6 }
  0x16   :  { %212 = vmatmul.mubr.msk.bf16.vlgmr.msra.gmra.mxu0 %vm78_vm1, %v225_v7 }
  0xd6   :  { %v213_v9 = vpop.f32.mrf.mxu0 }
  0xd7   :  { %v162_v10 = vadd.f32 %v213_v9, %v193_v8 }
  0xd8   :  { %v123_v11 = vpop.f32.mrf.mxu0 }
  0xd9   :  { %166 = vst [vmem:[#allocation3 + $0x10] sm:$0xff] %v162_v10  ;;  %v160_v12 = vadd.f32 %v193_v8, %v123_v11 }
  0xda   :  { %v214_v13 = vpop.f32.mrf.mxu0 }
  0xdb   :  { %164 = vst [vmem:[#allocation3] sm:$0xff] %v160_v12  ;;  %v163_v14 = vadd.f32 %v214_v13, %v193_v8 }
  0xdc   :  { %v126_v15 = vpop.f32.mrf.mxu0 }
  0xdd   :  { %167 = vst [vmem:[#allocation3 + $0x18] sm:$0xff] %v163_v14  ;;  %v161_v16 = vadd.f32 %v193_v8, %v126_v15 }
  0xdf   :  { %165 = vst [vmem:[#allocation3 + $0x8] sm:$0xff] %v161_v16 }
  0xe0   :  { %237 = shalt.err (!%p234_p4)
}
  0xe1   :  { %s249_s1 = smov 128   ;;  %s250_s2 = smov 8  }
  0xe2   :  { %179 = dma.vmem_to_hbm [thread:$0]  %s174_s29, 512, %s301_s3, [#allocation4], %s249_s1, %s249_s1, %s250_s2  }
  0xe3   :  { %246 = dma.done.wait [#allocation4], 512  }
  0xe4   :  { %247 = vsyncadd [#allocation4], 4294966784 }
  0xe5   :  { %183 = vsyncpa [#allocation4], 1 }

</bundles_post_ra>
